<compile_context>
chip_gen: v7x
topology: tpu7x:2x2x1
jax: 0.10.0
libtpu: 0.0.40
codegen_flags: <defaults>
</compile_context>

<pallas_src>
import math

import jax
import jax.numpy as jnp
from jax import lax
from jax.experimental import pallas as pl
from jax.experimental.pallas import tpu as pltpu

_LANE = 128
_SUBLANE = 8
_TARGET_BLOCK_BYTES = 2 * 1024 * 1024   # f32-equivalent per-input block target
_MAX_BLOCK_BYTES = 4 * 1024 * 1024      # keep 2 inputs x 2 buffers + f32 temps inside v7x's 64 MiB
_MIN_BLOCK_BYTES = 4 * 1024
_PAR_TARGET = 8                          # desired parallel grid extent (megacore / v7x)


def _round_up(x, m):
    return ((x + m - 1) // m) * m


def _cdiv(a, b):
    return -(-a // b)


def _pick_m_split(mb_total, want):
    """Split the m (reduction) axis into P parallel chunks of mb_per blocks.

    Prefers exact divisors (zero redundant work); otherwise accepts a small
    (<= 1/16) tail of fully-masked redundant blocks; else no split.
    """
    want = min(want, mb_total)
    if want <= 1 or mb_total <= 1:
        return 1, mb_total
    for cand in range(want, 1, -1):
        if mb_total % cand == 0:
            return cand, mb_total // cand
    for cand in range(want, 1, -1):
        mb_per = _cdiv(mb_total, cand)
        p = _cdiv(mb_total, mb_per)
        if p * mb_per - mb_total <= mb_total // 16:
            return p, mb_per
    return 1, mb_total


def dice_loss_with_logits(logits, target, *, channelwise=True, eps=1e-7,
                          block_bytes=_TARGET_BLOCK_BYTES):
    """Equivalent of DiceLossWithLogits(channelwise=...).forward(logits, target)."""
    if logits.shape != target.shape:
        raise ValueError(
            f"Expect Dice input and target of same shape, got: "
            f"{logits.shape}, {target.shape}.")
    if logits.ndim < 2:
        raise ValueError("Input must be at least 2d.")

    N, C = int(logits.shape[0]), int(logits.shape[1])
    R = N * C
    M = int(math.prod(logits.shape[2:])) if logits.ndim > 2 else 1

    # Keep native floating dtypes end-to-end (no f32 cast in HBM).
    x = logits if jnp.issubdtype(logits.dtype, jnp.floating) else logits.astype(jnp.float32)
    t = target if jnp.issubdtype(target.dtype, jnp.floating) else target.astype(jnp.float32)

    # Contiguous (free) reshape: (N, C, ...) -> (N*C, M).  No transpose, no pad.
    x = x.reshape(R, M)
    t = t.reshape(R, M)

    # bf16 inputs keep elementwise products in bf16 (v6e/v7x VALU win);
    # accumulation is always f32.
    compute_dtype = (jnp.bfloat16
                     if x.dtype == jnp.bfloat16 and t.dtype == jnp.bfloat16
                     else jnp.float32)

    # ---------------- tile selection (no HBM padding; ragged edges masked) ----
    block_bytes = int(min(_MAX_BLOCK_BYTES, max(_MIN_BLOCK_BYTES, int(block_bytes))))
    budget_elems = max(_LANE * _SUBLANE, block_bytes // 4)       # f32-equivalent elements

    lane_groups = max(1, _cdiv(M, _LANE))                        # 128-lane groups covering M
    TR = R if R <= _SUBLANE else _SUBLANE
    tm_groups = max(1, min(lane_groups, budget_elems // (max(TR, 1) * _LANE)))
    TM = tm_groups * _LANE
    MB_TOTAL = max(1, _cdiv(M, TM))

    if R > _SUBLANE:
        # Grow rows/block to fill the budget, but keep ~_PAR_TARGET row blocks
        # so both TensorCores (v7x) get work.
        tr_budget = max(_SUBLANE, (budget_elems // TM) // _SUBLANE * _SUBLANE)
        tr_par = _round_up(_cdiv(R, _PAR_TARGET), _SUBLANE)
        TR = int(min(tr_budget, tr_par, _round_up(R, _SUBLANE)))
    RB = _cdiv(R, TR)
    R_OUT = RB * TR

    P, MB_PER = _pick_m_split(MB_TOTAL, _cdiv(_PAR_TARGET, RB))

    needs_mask = (P * MB_PER * TM) > M
    grid = (P, RB, MB_PER)

    # ---------------- kernel ----------------
    def kernel(x_ref, t_ref, num_ref, den_ref):
        m_id = pl.program_id(2)

        @pl.when(m_id == 0)
        def _init():
            num_ref[...] = jnp.zeros_like(num_ref)
            den_ref[...] = jnp.zeros_like(den_ref)

        # Single-transcendental sigmoid: sigmoid(x) = 0.5 * (tanh(x/2) + 1).
        xv = x_ref[...].astype(jnp.float32)
        p = (0.5 * (jnp.tanh(xv * 0.5) + 1.0)).astype(compute_dtype)
        tv = t_ref[...].astype(compute_dtype)

        if needs_mask:
            # Ragged / redundant blocks: zero every column whose flat index >= M.
            m_logical = pl.program_id(0) * MB_PER + m_id
            col = m_logical * TM + lax.broadcasted_iota(jnp.int32, (TR, TM), 1)
            valid = col < M
            zero = jnp.zeros((), compute_dtype)
            p = jnp.where(valid, p, zero)
            tv = jnp.where(valid, tv, zero)

        num = jnp.sum((p * tv).astype(jnp.float32), axis=-1, keepdims=True)          # (TR, 1)
        den = jnp.sum((p * p + tv * tv).astype(jnp.float32), axis=-1, keepdims=True)  # (TR, 1)
        num_ref[0, :, :] += num
        den_ref[0, :, :] += den

    def in_map(p_, r_, m_):
        # Redundant (fully out-of-range) m-chunks re-read the last valid block;
        # their contribution is zeroed by the column mask in the kernel.
        return (r_, jnp.minimum(p_ * MB_PER + m_, MB_TOTAL - 1))

    in_spec = pl.BlockSpec((TR, TM), in_map)
    out_spec = pl.BlockSpec((1, TR, 1), lambda p_, r_, m_: (p_, r_, 0))

    # VMEM budget: double-buffered inputs + f32/int32 in-kernel intermediates
    # (p, t, products, iota/mask) + tiny accumulators + slack.
    elems_blk = _round_up(TR, _SUBLANE) * TM
    in_bytes = 2 * elems_blk * (x.dtype.itemsize + t.dtype.itemsize)
    tmp_bytes = 6 * elems_blk * 4
    out_bytes = 2 * 2 * _round_up(TR, _SUBLANE) * _LANE * 4
    vmem_need = in_bytes + tmp_bytes + out_bytes + (2 << 20)
    vmem_limit = int(min(56 << 20, max(32 << 20, vmem_need)))   # never below vmem_need

    num_p, den_p = pl.pallas_call(
        kernel,
        out_shape=(jax.ShapeDtypeStruct((P, R_OUT, 1), jnp.float32),
                   jax.ShapeDtypeStruct((P, R_OUT, 1), jnp.float32)),
        grid_spec=pltpu.PrefetchScalarGridSpec(
            num_scalar_prefetch=0,
            grid=grid,
            in_specs=[in_spec, in_spec],
            out_specs=[out_spec, out_spec],
        ),
        compiler_params=pltpu.CompilerParams(
            dimension_semantics=("parallel", "parallel", "arbitrary"),
            vmem_limit_bytes=vmem_limit),
    )(x, t)

    # ---------------- tiny combine in plain JAX ----------------
    num_rows = jnp.sum(num_p[:, :R, 0], axis=0)   # (N*C,)
    den_rows = jnp.sum(den_p[:, :R, 0], axis=0)   # (N*C,)
    if channelwise:
        num_c = num_rows.reshape(N, C).sum(axis=0)   # (C,)
        den_c = den_rows.reshape(N, C).sum(axis=0)
        score = 2.0 * (num_c / jnp.maximum(den_c, eps))
        return jnp.sum(1.0 - score)
    num_all = num_rows.sum()
    den_all = den_rows.sum()
    return 1.0 - 2.0 * (num_all / jnp.maximum(den_all, eps))


def _reference(logits, target, channelwise=True, eps=1e-7):
    """Pure-JAX reference mirroring the PyTorch module."""
    p = jax.nn.sigmoid(logits.astype(jnp.float32))
    t = target.astype(jnp.float32)
    if channelwise:
        C = logits.shape[1]
        pf = jnp.moveaxis(p, 1, 0).reshape(C, -1)
        tf = jnp.moveaxis(t, 1, 0).reshape(C, -1)
        num = jnp.sum(pf * tf, axis=-1)
        den = jnp.sum(pf * pf, axis=-1) + jnp.sum(tf * tf, axis=-1)
        score = 2.0 * (num / jnp.maximum(den, eps))
        return jnp.sum(1.0 - score)
    num = jnp.sum(p * t)
    den = jnp.sum(p * p) + jnp.sum(t * t)
    return 1.0 - 2.0 * (num / jnp.maximum(den, eps))


def _check(logits, target, channelwise=True, atol=1e-4, rtol=1e-4, **kw):
    out = dice_loss_with_logits(logits, target, channelwise=channelwise, **kw)
    out = jax.block_until_ready(out)
    ref = _reference(logits, target, channelwise=channelwise)
    assert jnp.allclose(out, ref, atol=atol, rtol=rtol), (out, ref)


if __name__ == "__main__":
    key = jax.random.PRNGKey(0)

    # 1) Primary case: N=2, C=4, H=W=16 (single grid step, no mask needed).
    k1, k2, key = jax.random.split(key, 3)
    logits = jax.random.normal(k1, (2, 4, 16, 16), dtype=jnp.float32)
    target = jax.random.bernoulli(k2, p=0.3, shape=(2, 4, 16, 16)).astype(jnp.float32)
    _check(logits, target, channelwise=True)
    _check(logits, target, channelwise=False)

    # 2) Non-128-multiple spatial size + odd channel count (ragged-column mask path).
    k1, k2, key = jax.random.split(key, 3)
    logits2 = jax.random.normal(k1, (2, 3, 7, 9), dtype=jnp.float32)
    target2 = jax.random.bernoulli(k2, p=0.5, shape=(2, 3, 7, 9)).astype(jnp.float32)
    _check(logits2, target2)

    # 3) Tiny block budget -> multi-m-tile reduction + parallel m-split path.
    k1, k2, key = jax.random.split(key, 3)
    logits3 = jax.random.normal(k1, (2, 3, 48, 48), dtype=jnp.float32)
    target3 = jax.random.bernoulli(k2, p=0.4, shape=(2, 3, 48, 48)).astype(jnp.float32)
    _check(logits3, target3, block_bytes=8 * 1024)

    # 4) N*C > 8 -> multiple-of-8 row blocks with a ragged last row block.
    k1, k2, key = jax.random.split(key, 3)
    logits4 = jax.random.normal(k1, (3, 5, 32, 40), dtype=jnp.float32)
    target4 = jax.random.bernoulli(k2, p=0.5, shape=(3, 5, 32, 40)).astype(jnp.float32)
    _check(logits4, target4)

    # 5) bf16 inputs (bf16 elementwise products, f32 accumulation).
    k1, k2, key = jax.random.split(key, 3)
    logits5 = jax.random.normal(k1, (2, 4, 16, 16), dtype=jnp.bfloat16)
    target5 = jax.random.bernoulli(k2, p=0.3, shape=(2, 4, 16, 16)).astype(jnp.bfloat16)
    _check(logits5, target5, atol=3e-2, rtol=3e-2)

    print("KERNEL_OK")
</pallas_src>

<mosaic_0001>
module attributes {stable_mosaic.version = 11 : i64} {
  func.func @kernel(%arg0: i32, %arg1: i32, %arg2: i32, %arg3: memref<8x256xf32, #tpu.memory_space<vmem>>, %arg4: memref<8x256xf32, #tpu.memory_space<vmem>>, %arg5: memref<1x8x1xf32, #tpu.memory_space<vmem>>, %arg6: memref<1x8x1xf32, #tpu.memory_space<vmem>>) attributes {dimension_semantics = [#tpu.dimension_semantics<parallel>, #tpu.dimension_semantics<parallel>, #tpu.dimension_semantics<arbitrary>], iteration_bounds = array<i64: 1, 1, 1>, scalar_prefetch = 0 : i64, scratch_operands = 0 : i64, tpu.core_type = #tpu.core_type<tc>, window_params = [{transform_indices = @transform_0, window_bounds = array<i64: 8, 256>}, {transform_indices = @transform_1, window_bounds = array<i64: 8, 256>}, {transform_indices = @transform_2, window_bounds = array<i64: 1, 8, 1>}, {transform_indices = @transform_3, window_bounds = array<i64: 1, 8, 1>}]} {
    %c0_i32 = arith.constant 0 : i32
    %0 = arith.cmpi eq, %arg2, %c0_i32 : i32
    %1 = arith.extui %0 : i1 to i32
    %c0_i32_0 = arith.constant 0 : i32
    %2 = arith.cmpi ne, %1, %c0_i32_0 : i32
    scf.if %2 {
      %cst_20 = arith.constant 0.000000e+00 : f32
      %32 = vector.broadcast %cst_20 : f32 to vector<1x8x1xf32>
      %c0_21 = arith.constant 0 : index
      %c0_22 = arith.constant 0 : index
      %c0_23 = arith.constant 0 : index
      %33 = vector.load %arg5[%c0_21, %c0_22, %c0_23] : memref<1x8x1xf32, #tpu.memory_space<vmem>>, vector<1x8x1xf32>
      tpu.vector_store %arg5[%c0_21, %c0_22, %c0_23], %32 {strides = array<i32>} : memref<1x8x1xf32, #tpu.memory_space<vmem>>, vector<1x8x1xf32>,
      %cst_24 = arith.constant 0.000000e+00 : f32
      %34 = vector.broadcast %cst_24 : f32 to vector<1x8x1xf32>
      %c0_25 = arith.constant 0 : index
      %c0_26 = arith.constant 0 : index
      %c0_27 = arith.constant 0 : index
      %35 = vector.load %arg6[%c0_25, %c0_26, %c0_27] : memref<1x8x1xf32, #tpu.memory_space<vmem>>, vector<1x8x1xf32>
      tpu.vector_store %arg6[%c0_25, %c0_26, %c0_27], %34 {strides = array<i32>} : memref<1x8x1xf32, #tpu.memory_space<vmem>>, vector<1x8x1xf32>,
    } else {
    }
    %c0 = arith.constant 0 : index
    %c0_1 = arith.constant 0 : index
    %3 = vector.load %arg3[%c0, %c0_1] : memref<8x256xf32, #tpu.memory_space<vmem>>, vector<8x256xf32>
    %cst = arith.constant 5.000000e-01 : f32
    %4 = vector.broadcast %cst : f32 to vector<8x256xf32>
    %5 = arith.mulf %3, %4 : vector<8x256xf32>
    %6 = math.tanh %5 : vector<8x256xf32>
    %cst_2 = arith.constant 1.000000e+00 : f32
    %7 = vector.broadcast %cst_2 : f32 to vector<8x256xf32>
    %8 = arith.addf %6, %7 : vector<8x256xf32>
    %cst_3 = arith.constant 5.000000e-01 : f32
    %9 = vector.broadcast %cst_3 : f32 to vector<8x256xf32>
    %10 = arith.mulf %9, %8 : vector<8x256xf32>
    %c0_4 = arith.constant 0 : index
    %c0_5 = arith.constant 0 : index
    %11 = vector.load %arg4[%c0_4, %c0_5] : memref<8x256xf32, #tpu.memory_space<vmem>>, vector<8x256xf32>
    %12 = arith.mulf %10, %11 : vector<8x256xf32>
    %cst_6 = arith.constant dense<0.000000e+00> : vector<8xf32>
    %13 = vector.multi_reduction <add>, %12, %cst_6 [1] : vector<8x256xf32> to vector<8xf32>
    %14 = vector.shape_cast %13 : vector<8xf32> to vector<8x1xf32>
    %15 = arith.mulf %10, %10 : vector<8x256xf32>
    %16 = arith.mulf %11, %11 : vector<8x256xf32>
    %17 = arith.addf %15, %16 : vector<8x256xf32>
    %cst_7 = arith.constant dense<0.000000e+00> : vector<8xf32>
    %18 = vector.multi_reduction <add>, %17, %cst_7 [1] : vector<8x256xf32> to vector<8xf32>
    %19 = vector.shape_cast %18 : vector<8xf32> to vector<8x1xf32>
    %c0_8 = arith.constant 0 : index
    %c0_9 = arith.constant 0 : index
    %c0_10 = arith.constant 0 : index
    %20 = vector.load %arg5[%c0_8, %c0_9, %c0_10] : memref<1x8x1xf32, #tpu.memory_space<vmem>>, vector<1x8x1xf32>
    %21 = vector.shape_cast %20 : vector<1x8x1xf32> to vector<8x1xf32>
    %22 = arith.addf %21, %14 : vector<8x1xf32>
    %c0_11 = arith.constant 0 : index
    %c0_12 = arith.constant 0 : index
    %c0_13 = arith.constant 0 : index
    %23 = vector.load %arg5[%c0_11, %c0_12, %c0_13] : memref<1x8x1xf32, #tpu.memory_space<vmem>>, vector<1x8x1xf32>
    %24 = vector.shape_cast %23 : vector<1x8x1xf32> to vector<8x1xf32>
    %25 = vector.shape_cast %22 : vector<8x1xf32> to vector<1x8x1xf32>
    tpu.vector_store %arg5[%c0_11, %c0_12, %c0_13], %25 {strides = array<i32>} : memref<1x8x1xf32, #tpu.memory_space<vmem>>, vector<1x8x1xf32>,
    %c0_14 = arith.constant 0 : index
    %c0_15 = arith.constant 0 : index
    %c0_16 = arith.constant 0 : index
    %26 = vector.load %arg6[%c0_14, %c0_15, %c0_16] : memref<1x8x1xf32, #tpu.memory_space<vmem>>, vector<1x8x1xf32>
    %27 = vector.shape_cast %26 : vector<1x8x1xf32> to vector<8x1xf32>
    %28 = arith.addf %27, %19 : vector<8x1xf32>
    %c0_17 = arith.constant 0 : index
    %c0_18 = arith.constant 0 : index
    %c0_19 = arith.constant 0 : index
    %29 = vector.load %arg6[%c0_17, %c0_18, %c0_19] : memref<1x8x1xf32, #tpu.memory_space<vmem>>, vector<1x8x1xf32>
    %30 = vector.shape_cast %29 : vector<1x8x1xf32> to vector<8x1xf32>
    %31 = vector.shape_cast %28 : vector<8x1xf32> to vector<1x8x1xf32>
    tpu.vector_store %arg6[%c0_17, %c0_18, %c0_19], %31 {strides = array<i32>} : memref<1x8x1xf32, #tpu.memory_space<vmem>>, vector<1x8x1xf32>,
    return
  }
  func.func @transform_0(%arg0: i32, %arg1: i32, %arg2: i32) -> (i32, i32) {
    %c1_i32 = arith.constant 1 : i32
    %0 = arith.muli %arg0, %c1_i32 : i32
    %1 = arith.addi %0, %arg2 : i32
    %c0_i32 = arith.constant 0 : i32
    %2 = arith.minsi %1, %c0_i32 : i32
    %c0_i32_0 = arith.constant 0 : i32
    return %arg1, %2 : i32, i32
  }
  func.func @transform_1(%arg0: i32, %arg1: i32, %arg2: i32) -> (i32, i32) {
    %c1_i32 = arith.constant 1 : i32
    %0 = arith.muli %arg0, %c1_i32 : i32
    %1 = arith.addi %0, %arg2 : i32
    %c0_i32 = arith.constant 0 : i32
    %2 = arith.minsi %1, %c0_i32 : i32
    %c0_i32_0 = arith.constant 0 : i32
    return %arg1, %2 : i32, i32
  }
  func.func @transform_2(%arg0: i32, %arg1: i32, %arg2: i32) -> (i32, i32, i32) {
    %c0_i32 = arith.constant 0 : i32
    %c0_i32_0 = arith.constant 0 : i32
    return %arg0, %arg1, %c0_i32 : i32, i32, i32
  }
  func.func @transform_3(%arg0: i32, %arg1: i32, %arg2: i32) -> (i32, i32, i32) {
    %c0_i32 = arith.constant 0 : i32
    %c0_i32_0 = arith.constant 0 : i32
    return %arg0, %arg1, %c0_i32 : i32, i32, i32
  }
}

</mosaic_0001>

<bundles_post_ra>
// kernel: tpu_custom_call.1
= control target key start
LH: loop header
LB: loop body
LE: loop exit
PB: predicated region body
PF: predicated region fallthrough
CT: control target
= control target key end

     0   :  { %9 = vsyncpa [#allocation3], 0  ;;  %s235_s0 = inlined_call_operand.hbm [shape: f32[8,256], index: 0, kind: input, shape index: {}]   ;;  %s236_s1 = inlined_call_operand.hbm [shape: f32[8,256], index: 1, kind: input, shape index: {}]   ;;  %s237_s2 = inlined_call_operand.vmem [shape: f32[1,8,1], index: 2, kind: output, shape index: {0}]   ;;  %s238_s3 = inlined_call_operand.vmem [shape: f32[1,8,1], index: 3, kind: output, shape index: {1}]  }
   0x1   :  { %10 = vsyncpa [#allocation5], 0  ;;  %s166_s12 = smov [#allocation2]   ;;  %s167_s14 = smov [#allocation4]  }
   0x2   :  { %s23_s13 = sshll.u32 %s166_s12, 4  ;;  %s39_s15 = sshll.u32 %s167_s14, 4  ;;  %s24_s13 = int_to_ptr.vmem [resolvable:$true] %s23_s13  ;;  %s40_s15 = int_to_ptr.vmem [resolvable:$true] %s39_s15 }
   0x3   :  { %s118_s18 = scalar_lea.hbm %s235_s0, 256 }
   0x4   :  { %p119_p0 = scmp.ne.s32.totalorder %s235_s0, %s118_s18  ;;  %p122_p1 = scmp.lt.u32.totalorder %s118_s18, %s235_s0 }
   0x6   :  { %p124_p2 = pnand %p122_p1, %p119_p0 }
   0x8   :  { %127 = shalt.err (!%p124_p2)
}
   0x9   :  { %s128_s23 = scalar_lea.vmem %s24_s13, 256  ;;  %p133_p4 = scmp.lt.s32.totalorder %s24_s13, %s24_s13 }
   0xa   :  { %p129_p3 = scmp.ne.s32.totalorder %s24_s13, %s128_s23  ;;  %p134_p5 = scmp.lt.s32.totalorder %s128_s23, %s128_s23 }
   0xc   :  { %p135_p6 = por %p134_p5, %p133_p4 }
   0xe   :  { %p136_p7 = pnand %p135_p6, %p129_p3 }
  0x10   :  { %139 = shalt.err (!%p136_p7)
}
  0x11   :  { %26 = dma.hbm_to_vmem [thread:$0]  %s235_s0, 256, %s24_s13, [#allocation3]  }
  0x12   :  { %s140_s28 = scalar_lea.hbm %s236_s1, 256 }
  0x13   :  { %p141_p8 = scmp.ne.s32.totalorder %s236_s1, %s140_s28  ;;  %p144_p9 = scmp.lt.u32.totalorder %s140_s28, %s236_s1 }
  0x15   :  { %p146_p10 = pnand %p144_p9, %p141_p8 }
  0x17   :  { %149 = shalt.err (!%p146_p10)
}
  0x18   :  { %s150_s6 = scalar_lea.vmem %s40_s15, 256  ;;  %p155_p12 = scmp.lt.s32.totalorder %s40_s15, %s40_s15 }
  0x19   :  { %p151_p11 = scmp.ne.s32.totalorder %s40_s15, %s150_s6  ;;  %p156_p13 = scmp.lt.s32.totalorder %s150_s6, %s150_s6 }
  0x1b   :  { %p157_p0 = por %p156_p13, %p155_p12 }
  0x1d   :  { %p158_p1 = pnand %p157_p0, %p151_p11 }
  0x1f   :  { %161 = shalt.err (!%p158_p1)
}
  0x20   :  { %42 = dma.hbm_to_vmem [thread:$0]  %s236_s1, 256, %s40_s15, [#allocation5]  }
  0x21   :  { %162 = dma.done.wait [#allocation3], 256  }
  0x22   :  { %163 = vsyncadd [#allocation3], 4294967040 }
  0x23   :  { %164 = dma.done.wait [#allocation5], 256  }
  0x24   :  { %165 = vsyncadd [#allocation5], 4294967040  ;;  %vm61_vm0 = vcmask 7168   ;;  %v168_v0 = vmov 0.0   ;;  %v64_v1 = vld [vmem:[#allocation2] sm:$0xff]  ;;  %v65_v2 = vld [vmem:[#allocation2 + $0x8] sm:$0xff] }
  0x25   :  { %62 = vst.msk [vmem:[%s237_s2] sm:$0xff] %vm61_vm0, %v168_v0  ;;  %63 = vst.msk [vmem:[%s238_s3] sm:$0xff] %vm61_vm0, %v168_v0  ;;  %v66_v3 = vmul.f32 0.5, %v64_v1  ;;  %v67_v4 = vmul.f32 0.5, %v65_v2  ;;  %v74_v9 = vld [vmem:[#allocation4] sm:$0xff]  ;;  %v75_v11 = vld [vmem:[#allocation4 + $0x8] sm:$0xff] }
  0x26   :  { %v83_v12 = vmul.f32 %v74_v9, %v74_v9  ;;  %v84_v14 = vmul.f32 %v75_v11, %v75_v11 }
  0x27   :  { %114 = vtanh.f32 %v66_v3 }
  0x28   :  { %116 = vtanh.f32 %v67_v4 }
  0x2c   :  { %v90_v23 = vld [vmem:[%s237_s2] sm:$0xff] }
  0x2d   :  { %v94_v26 = vld [vmem:[%s238_s3] sm:$0xff] }
  0x31   :  { %v115_v5 = vpop.eup %114 }
  0x32   :  { %v117_v6 = vpop.eup %116  ;;  %v70_v7 = vadd.f32 1.0, %v115_v5 }
  0x33   :  { %v71_v8 = vadd.f32 1.0, %v117_v6 }
  0x34   :  { %v72_v10 = vmul.f32 0.5, %v70_v7 }
  0x35   :  { %v73_v13 = vmul.f32 0.5, %v71_v8 }
  0x36   :  { %v76_v15 = vmul.f32 %v74_v9, %v72_v10  ;;  %v81_v16 = vmul.f32 %v72_v10, %v72_v10 }
  0x37   :  { %v77_v17 = vmul.f32 %v75_v11, %v73_v13  ;;  %v82_v18 = vmul.f32 %v73_v13, %v73_v13 }
  0x38   :  { %v85_v19 = vadd.f32 %v83_v12, %v81_v16 }
  0x39   :  { %v78_v20 = vadd.f32 %v77_v17, %v76_v15  ;;  %v86_v21 = vadd.f32 %v84_v14, %v82_v18 }
  0x3b   :  { %79 = vadd.xlane.f32.xlu0 %v78_v20  ;;  %v87_v22 = vadd.f32 %v86_v21, %v85_v19 }
  0x3f   :  { %88 = vadd.xlane.f32.xlu0 %v87_v22 }
  0xc8   :  { %v80_v24 = vpop.xlane.xlu0 %79 }
  0xc9   :  { %v91_v25 = vadd.f32 %v90_v23, %v80_v24 }
  0xcb   :  { %93 = vst.msk [vmem:[%s237_s2] sm:$0xff] %vm61_vm0, %v91_v25 }
  0xcc   :  { %v89_v27 = vpop.xlane.xlu0 %88 }
  0xcd   :  { %v95_v28 = vadd.f32 %v94_v26, %v89_v27 }
  0xcf   :  { %96 = vst.msk [vmem:[%s238_s3] sm:$0xff] %vm61_vm0, %v95_v28 }
  0xd0   :  { %105 = vsyncpa [#allocation3], 1 }
  0xd1   :  { %106 = vsyncpa [#allocation5], 1 }

</bundles_post_ra>
